<compile_context>
chip_gen: v6e
topology: v6e:2x2x1
jax: 0.10.0
libtpu: 0.0.40
codegen_flags: <defaults>
</compile_context>

<pallas_src>
import functools

import jax
import jax.numpy as jnp
from jax.experimental import pallas as pl
from jax.experimental.pallas import tpu as pltpu


def _vmem_specs(n):
    return [pl.BlockSpec(memory_space=pltpu.MemorySpace.VMEM) for _ in range(n)]


# ----------------------------------------------------------------------------
# Pallas kernels
# ----------------------------------------------------------------------------
def _tcn_block_kernel(x_ref, w0_ref, s0_ref, b0_ref, a0_ref,
                      w1_ref, s1_ref, b1_ref, a1_ref,
                      dw_ref, db_ref, af_ref,
                      o_ref, pad0_ref, pad1_ref,
                      *, dilation, kmax):
    """One fused MultibranchTemporalBlock (inference).

    x_ref   : (B, T, Cin)
    w0_ref  : (Kmax*Cin,  Cout) bf16  fused 1st branch-set weight (taps of the
                                      K<Kmax branches zero-padded, branches
                                      concatenated along Cout)
    w1_ref  : (Kmax*Cout, Cout) bf16  fused 2nd branch-set weight
    s*/b*/a*: (1, Cout) f32           folded BN scale / shift(+bias) / PReLU slope
    dw_ref  : (Cin, Cout) bf16        1x1 downsample conv weight
    db_ref  : (1, Cout) f32           downsample bias
    af_ref  : (1, Cout) f32           block-final PReLU slope
    o_ref   : (B, T, Cout)
    pad0_ref: (B, T + (Kmax-1)*dilation, Cin)  VMEM scratch (causal left pad)
    pad1_ref: (B, T + (Kmax-1)*dilation, Cout) VMEM scratch
    """
    B, T, Cin = x_ref.shape
    Cout = o_ref.shape[-1]
    P = (kmax - 1) * dilation

    def conv_set(pad_ref, src, c, w_ref, s_ref, b_ref, a_ref):
        # causal left padding done in VMEM (no HBM jnp.pad round trip)
        pad_ref[...] = jnp.zeros_like(pad_ref)
        pad_ref[:, P:, :] = src
        # im2col: one lane-dense matmul covers all taps and all branches
        cols = [pad_ref[:, j * dilation:j * dilation + T, :]
                for j in range(kmax)]
        im = jnp.concatenate(cols, axis=-1).reshape(B * T, kmax * c)
        y = jnp.dot(im.astype(jnp.bfloat16), w_ref[...],
                    preferred_element_type=jnp.float32)
        y = y * s_ref[...] + b_ref[...]                 # folded BatchNorm (+ conv bias)
        return jnp.where(y > 0, y, a_ref[...] * y)      # per-channel PReLU

    out0 = conv_set(pad0_ref, x_ref[...], Cin, w0_ref, s0_ref, b0_ref, a0_ref)
    # dropout0: identity at inference
    out1 = conv_set(pad1_ref, out0.reshape(B, T, Cout), Cout,
                    w1_ref, s1_ref, b1_ref, a1_ref)
    # dropout1: identity at inference

    # residual 1x1-conv downsample: plain matmul + bias (no BN / PReLU)
    res = jnp.dot(x_ref[...].reshape(B * T, Cin).astype(jnp.bfloat16),
                  dw_ref[...], preferred_element_type=jnp.float32) + db_ref[...]

    y = out1 + res
    af = af_ref[...]
    o_ref[...] = jnp.where(y > 0, y, af * y).reshape(B, T, Cout)


def _mean_fc_kernel(x_ref, len_ref, w_ref, b_ref, o_ref):
    """Consensus 'mean' over the first length[b] steps, fused with final Linear."""
    B, T, C = x_ref.shape
    lens = jnp.clip(len_ref[...], 1, T)                       # (B, 1); avoid /0
    t_idx = jax.lax.broadcasted_iota(jnp.int32, (B, T, 1), 1)
    mask = t_idx < lens.reshape(B, 1, 1)                      # (B, T, 1)
    pooled = jnp.sum(jnp.where(mask, x_ref[...], 0.0), axis=1)
    pooled = pooled / lens.astype(jnp.float32)                # (B, C)
    o_ref[...] = jnp.dot(pooled, w_ref[...],
                         preferred_element_type=jnp.float32) + b_ref[...]


# ----------------------------------------------------------------------------
# pallas_call wrappers
# ----------------------------------------------------------------------------
def tcn_block(x, bp, dilation, kmax):
    B, T, Cin = x.shape
    Cout = bp['s0'].shape[-1]
    P = (kmax - 1) * dilation
    return pl.pallas_call(
        functools.partial(_tcn_block_kernel, dilation=dilation, kmax=kmax),
        out_shape=jax.ShapeDtypeStruct((B, T, Cout), jnp.float32),
        in_specs=_vmem_specs(12),
        out_specs=pl.BlockSpec(memory_space=pltpu.MemorySpace.VMEM),
        scratch_shapes=[pltpu.VMEM((B, T + P, Cin), jnp.float32),
                        pltpu.VMEM((B, T + P, Cout), jnp.float32)],
    )(x, bp['w0'], bp['s0'], bp['b0'], bp['a0'],
      bp['w1'], bp['s1'], bp['b1'], bp['a1'],
      bp['dw'], bp['db'], bp['af'])


def mean_fc(x, lengths, w, b):
    B, T, C = x.shape
    N = w.shape[1]
    lens = lengths.astype(jnp.int32).reshape(B, 1)
    return pl.pallas_call(
        _mean_fc_kernel,
        out_shape=jax.ShapeDtypeStruct((B, N), jnp.float32),
        in_specs=_vmem_specs(4),
        out_specs=pl.BlockSpec(memory_space=pltpu.MemorySpace.VMEM),
    )(x, lens, w, b)


# ----------------------------------------------------------------------------
# Deterministic parameter construction (synthetic; mirrors the torch shapes)
# ----------------------------------------------------------------------------
def _init_cbcr(key, cin, cout, ksize):
    """ConvBatchChompRelu params with eval-mode BN folded into (scale, bias)."""
    kw, kb, kg, kbt, km, kv, ka = jax.random.split(key, 7)
    w = 0.05 * jax.random.normal(kw, (ksize, cin, cout), jnp.float32)
    b = 0.05 * jax.random.normal(kb, (cout,), jnp.float32)
    gamma = 1.0 + 0.05 * jax.random.normal(kg, (cout,), jnp.float32)
    beta = 0.05 * jax.random.normal(kbt, (cout,), jnp.float32)
    mean = 0.05 * jax.random.normal(km, (cout,), jnp.float32)
    var = 1.0 + 0.05 * jax.random.uniform(kv, (cout,), jnp.float32)
    alpha = 0.25 + 0.01 * jax.random.normal(ka, (cout,), jnp.float32)
    s = gamma / jnp.sqrt(var + 1e-5)
    return dict(w=w,
                scale=s.reshape(1, cout),
                bias=(s * (b - mean) + beta).reshape(1, cout),
                alpha=alpha.reshape(1, cout))


def _fuse_branch_set(cbcr, kernel_sizes, kmax, cin):
    """Zero-pad K<Kmax taps + concat branches along Cout -> one matmul weight."""
    w_taps = []
    for p, k in zip(cbcr, kernel_sizes):
        cb = p['w'].shape[-1]
        wk = jnp.zeros((kmax, cin, cb), jnp.float32).at[kmax - k:].set(p['w'])
        w_taps.append(wk)
    w = jnp.concatenate(w_taps, axis=-1).reshape(kmax * cin, -1)
    cat = lambda name: jnp.concatenate([p[name] for p in cbcr], axis=-1)
    return w.astype(jnp.bfloat16), cat('scale'), cat('bias'), cat('alpha')


def init_classifier_backend(key, input_channels, hidden_channels, num_classes,
                            kernel_sizes):
    num_branches = len(kernel_sizes)
    kmax = max(kernel_sizes)
    keys = jax.random.split(key, len(hidden_channels) + 1)
    blocks = []
    for i, cout in enumerate(hidden_channels):
        cin = input_channels if i == 0 else hidden_channels[i - 1]
        cb = cout // num_branches
        bkeys = jax.random.split(keys[i], 2 * num_branches + 2)
        cbcr0 = [_init_cbcr(bkeys[j], cin, cb, kernel_sizes[j])
                 for j in range(num_branches)]
        cbcr1 = [_init_cbcr(bkeys[num_branches + j], cout, cb, kernel_sizes[j])
                 for j in range(num_branches)]
        w0, s0, b0, a0 = _fuse_branch_set(cbcr0, kernel_sizes, kmax, cin)
        w1, s1, b1, a1 = _fuse_branch_set(cbcr1, kernel_sizes, kmax, cout)
        # downsample 1x1 conv (always present for these settings, matching ref)
        dw = 0.05 * jax.random.normal(bkeys[-2], (cin, cout), jnp.float32)
        db = 0.05 * jax.random.normal(bkeys[-1], (cout,), jnp.float32)
        blocks.append(dict(w0=w0, s0=s0, b0=b0, a0=a0,
                           w1=w1, s1=s1, b1=b1, a1=a1,
                           dw=dw.astype(jnp.bfloat16),
                           db=db.reshape(1, cout),
                           af=jnp.full((1, cout), 0.25, jnp.float32)))
    kfw, kfb = jax.random.split(keys[-1])
    fc_w = 0.05 * jax.random.normal(kfw, (hidden_channels[-1], num_classes),
                                    jnp.float32)
    fc_b = 0.05 * jax.random.normal(kfb, (num_classes,), jnp.float32)
    return dict(blocks=blocks, kernel_sizes=tuple(kernel_sizes),
                fc_w=fc_w, fc_b=fc_b.reshape(1, num_classes))


# ----------------------------------------------------------------------------
# Forward pass (4 pallas_calls total: 3 fused blocks + pooled linear head)
# ----------------------------------------------------------------------------
def classifier_backend_forward(params, x, lengths=None):
    """x: (B, T, C_in) f32; lengths: (B,) int32 or None. Returns (y, lengths)."""
    B, T, _ = x.shape
    if lengths is None:
        lengths = jnp.full((B,), T, jnp.int32)
    kmax = max(params['kernel_sizes'])
    out = x
    for i, blk in enumerate(params['blocks']):
        out = tcn_block(out, blk, 2 ** i, kmax)
    y = mean_fc(out, lengths, params['fc_w'], params['fc_b'])
    return y, lengths


# ----------------------------------------------------------------------------
if __name__ == "__main__":
    key = jax.random.PRNGKey(0)
    # small shapes consistent with the module (scaled-down 768 -> 12, 500 -> 16)
    B, T, C_in = 2, 8, 12
    hidden_channels = [12, 12, 12]          # scaled-down [256*3]*3
    kernel_sizes = [3, 5, 7]
    num_classes = 16

    k_params, k_x = jax.random.split(key)
    params = init_classifier_backend(k_params, C_in, hidden_channels,
                                     num_classes, kernel_sizes)
    x = jax.random.normal(k_x, (B, T, C_in), jnp.float32)
    lengths = jnp.array([T, T - 2], jnp.int32)

    y, out_len = classifier_backend_forward(params, x, lengths)
    jax.block_until_ready(y)
    assert y.shape == (B, num_classes) and out_len.shape == (B,)
    print("KERNEL_OK")
</pallas_src>

<mosaic_0001>
module attributes {stable_mosaic.version = 11 : i64} {
  func.func @_tcn_block_kernel(%arg0: memref<2x8x12xf32, #tpu.memory_space<vmem>>, %arg1: memref<84x12xbf16, #tpu.memory_space<vmem>>, %arg2: memref<1x12xf32, #tpu.memory_space<vmem>>, %arg3: memref<1x12xf32, #tpu.memory_space<vmem>>, %arg4: memref<1x12xf32, #tpu.memory_space<vmem>>, %arg5: memref<84x12xbf16, #tpu.memory_space<vmem>>, %arg6: memref<1x12xf32, #tpu.memory_space<vmem>>, %arg7: memref<1x12xf32, #tpu.memory_space<vmem>>, %arg8: memref<1x12xf32, #tpu.memory_space<vmem>>, %arg9: memref<12x12xbf16, #tpu.memory_space<vmem>>, %arg10: memref<1x12xf32, #tpu.memory_space<vmem>>, %arg11: memref<1x12xf32, #tpu.memory_space<vmem>>, %arg12: memref<2x8x12xf32, #tpu.memory_space<vmem>>, %arg13: memref<2x14x12xf32, #tpu.memory_space<vmem>>, %arg14: memref<2x14x12xf32, #tpu.memory_space<vmem>>) attributes {dimension_semantics = [], scalar_prefetch = 0 : i64, scratch_operands = 2 : i64, tpu.core_type = #tpu.core_type<tc>} {
    %c0 = arith.constant 0 : index
    %c0_0 = arith.constant 0 : index
    %c0_1 = arith.constant 0 : index
    %0 = vector.load %arg0[%c0, %c0_0, %c0_1] : memref<2x8x12xf32, #tpu.memory_space<vmem>>, vector<2x8x12xf32>
    %cst = arith.constant 0.000000e+00 : f32
    %1 = vector.broadcast %cst : f32 to vector<2x14x12xf32>
    %c0_2 = arith.constant 0 : index
    %c0_3 = arith.constant 0 : index
    %c0_4 = arith.constant 0 : index
    %2 = vector.load %arg13[%c0_2, %c0_3, %c0_4] : memref<2x14x12xf32, #tpu.memory_space<vmem>>, vector<2x14x12xf32>
    tpu.vector_store %arg13[%c0_2, %c0_3, %c0_4], %1 {strides = array<i32>} : memref<2x14x12xf32, #tpu.memory_space<vmem>>, vector<2x14x12xf32>,
    %c0_5 = arith.constant 0 : index
    %c6 = arith.constant 6 : index
    %c0_6 = arith.constant 0 : index
    %3 = vector.load %arg13[%c0_5, %c6, %c0_6] : memref<2x14x12xf32, #tpu.memory_space<vmem>>, vector<2x8x12xf32>
    tpu.vector_store %arg13[%c0_5, %c6, %c0_6], %0 {strides = array<i32>} : memref<2x14x12xf32, #tpu.memory_space<vmem>>, vector<2x8x12xf32>,
    %c0_7 = arith.constant 0 : index
    %c0_8 = arith.constant 0 : index
    %c0_9 = arith.constant 0 : index
    %4 = vector.load %arg13[%c0_7, %c0_8, %c0_9] : memref<2x14x12xf32, #tpu.memory_space<vmem>>, vector<2x8x12xf32>
    %c0_10 = arith.constant 0 : index
    %c1 = arith.constant 1 : index
    %c0_11 = arith.constant 0 : index
    %5 = vector.load %arg13[%c0_10, %c1, %c0_11] : memref<2x14x12xf32, #tpu.memory_space<vmem>>, vector<2x8x12xf32>
    %c0_12 = arith.constant 0 : index
    %c2 = arith.constant 2 : index
    %c0_13 = arith.constant 0 : index
    %6 = vector.load %arg13[%c0_12, %c2, %c0_13] : memref<2x14x12xf32, #tpu.memory_space<vmem>>, vector<2x8x12xf32>
    %c0_14 = arith.constant 0 : index
    %c3 = arith.constant 3 : index
    %c0_15 = arith.constant 0 : index
    %7 = vector.load %arg13[%c0_14, %c3, %c0_15] : memref<2x14x12xf32, #tpu.memory_space<vmem>>, vector<2x8x12xf32>
    %c0_16 = arith.constant 0 : index
    %c4 = arith.constant 4 : index
    %c0_17 = arith.constant 0 : index
    %8 = vector.load %arg13[%c0_16, %c4, %c0_17] : memref<2x14x12xf32, #tpu.memory_space<vmem>>, vector<2x8x12xf32>
    %c0_18 = arith.constant 0 : index
    %c5 = arith.constant 5 : index
    %c0_19 = arith.constant 0 : index
    %9 = vector.load %arg13[%c0_18, %c5, %c0_19] : memref<2x14x12xf32, #tpu.memory_space<vmem>>, vector<2x8x12xf32>
    %c0_20 = arith.constant 0 : index
    %c6_21 = arith.constant 6 : index
    %c0_22 = arith.constant 0 : index
    %10 = vector.load %arg13[%c0_20, %c6_21, %c0_22] : memref<2x14x12xf32, #tpu.memory_space<vmem>>, vector<2x8x12xf32>
    %11 = tpu.concatenate %4, %5, %6, %7, %8, %9, %10 in 2 : vector<2x8x12xf32>, vector<2x8x12xf32>, vector<2x8x12xf32>, vector<2x8x12xf32>, vector<2x8x12xf32>, vector<2x8x12xf32>, vector<2x8x12xf32> -> vector<2x8x84xf32>
    %12 = vector.shape_cast %11 : vector<2x8x84xf32> to vector<16x84xf32>
    %13 = arith.truncf %12 : vector<16x84xf32> to vector<16x84xbf16>
    %c0_23 = arith.constant 0 : index
    %c0_24 = arith.constant 0 : index
    %14 = vector.load %arg1[%c0_23, %c0_24] : memref<84x12xbf16, #tpu.memory_space<vmem>>, vector<84x12xbf16>
    %cst_25 = arith.constant dense<0.000000e+00> : vector<16x12xf32>
    %15 = tpu.matmul %13, %14, %cst_25 {dimension_numbers = #tpu.dot_dimension_numbers<[1], [0], [0], [1], [0, 0, 1, 1], [], []>} : vector<16x84xbf16>, vector<84x12xbf16>, vector<16x12xf32> -> vector<16x12xf32>
    %c0_26 = arith.constant 0 : index
    %c0_27 = arith.constant 0 : index
    %16 = vector.load %arg2[%c0_26, %c0_27] : memref<1x12xf32, #tpu.memory_space<vmem>>, vector<1x12xf32>
    %17 = vector.broadcast %16 : vector<1x12xf32> to vector<16x12xf32>
    %18 = arith.mulf %15, %17 : vector<16x12xf32>
    %c0_28 = arith.constant 0 : index
    %c0_29 = arith.constant 0 : index
    %19 = vector.load %arg3[%c0_28, %c0_29] : memref<1x12xf32, #tpu.memory_space<vmem>>, vector<1x12xf32>
    %20 = vector.broadcast %19 : vector<1x12xf32> to vector<16x12xf32>
    %21 = arith.addf %18, %20 : vector<16x12xf32>
    %cst_30 = arith.constant 0.000000e+00 : f32
    %22 = vector.broadcast %cst_30 : f32 to vector<16x12xf32>
    %23 = arith.cmpf ogt, %21, %22 : vector<16x12xf32>
    %c0_31 = arith.constant 0 : index
    %c0_32 = arith.constant 0 : index
    %24 = vector.load %arg4[%c0_31, %c0_32] : memref<1x12xf32, #tpu.memory_space<vmem>>, vector<1x12xf32>
    %25 = vector.broadcast %24 : vector<1x12xf32> to vector<16x12xf32>
    %26 = arith.mulf %25, %21 : vector<16x12xf32>
    %27 = arith.select %23, %21, %26 : vector<16x12xi1>, vector<16x12xf32>
    %28 = vector.shape_cast %27 : vector<16x12xf32> to vector<2x8x12xf32>
    %cst_33 = arith.constant 0.000000e+00 : f32
    %29 = vector.broadcast %cst_33 : f32 to vector<2x14x12xf32>
    %c0_34 = arith.constant 0 : index
    %c0_35 = arith.constant 0 : index
    %c0_36 = arith.constant 0 : index
    %30 = vector.load %arg14[%c0_34, %c0_35, %c0_36] : memref<2x14x12xf32, #tpu.memory_space<vmem>>, vector<2x14x12xf32>
    tpu.vector_store %arg14[%c0_34, %c0_35, %c0_36], %29 {strides = array<i32>} : memref<2x14x12xf32, #tpu.memory_space<vmem>>, vector<2x14x12xf32>,
    %c0_37 = arith.constant 0 : index
    %c6_38 = arith.constant 6 : index
    %c0_39 = arith.constant 0 : index
    %31 = vector.load %arg14[%c0_37, %c6_38, %c0_39] : memref<2x14x12xf32, #tpu.memory_space<vmem>>, vector<2x8x12xf32>
    tpu.vector_store %arg14[%c0_37, %c6_38, %c0_39], %28 {strides = array<i32>} : memref<2x14x12xf32, #tpu.memory_space<vmem>>, vector<2x8x12xf32>,
    %c0_40 = arith.constant 0 : index
    %c0_41 = arith.constant 0 : index
    %c0_42 = arith.constant 0 : index
    %32 = vector.load %arg14[%c0_40, %c0_41, %c0_42] : memref<2x14x12xf32, #tpu.memory_space<vmem>>, vector<2x8x12xf32>
    %c0_43 = arith.constant 0 : index
    %c1_44 = arith.constant 1 : index
    %c0_45 = arith.constant 0 : index
    %33 = vector.load %arg14[%c0_43, %c1_44, %c0_45] : memref<2x14x12xf32, #tpu.memory_space<vmem>>, vector<2x8x12xf32>
    %c0_46 = arith.constant 0 : index
    %c2_47 = arith.constant 2 : index
    %c0_48 = arith.constant 0 : index
    %34 = vector.load %arg14[%c0_46, %c2_47, %c0_48] : memref<2x14x12xf32, #tpu.memory_space<vmem>>, vector<2x8x12xf32>
    %c0_49 = arith.constant 0 : index
    %c3_50 = arith.constant 3 : index
    %c0_51 = arith.constant 0 : index
    %35 = vector.load %arg14[%c0_49, %c3_50, %c0_51] : memref<2x14x12xf32, #tpu.memory_space<vmem>>, vector<2x8x12xf32>
    %c0_52 = arith.constant 0 : index
    %c4_53 = arith.constant 4 : index
    %c0_54 = arith.constant 0 : index
    %36 = vector.load %arg14[%c0_52, %c4_53, %c0_54] : memref<2x14x12xf32, #tpu.memory_space<vmem>>, vector<2x8x12xf32>
    %c0_55 = arith.constant 0 : index
    %c5_56 = arith.constant 5 : index
    %c0_57 = arith.constant 0 : index
    %37 = vector.load %arg14[%c0_55, %c5_56, %c0_57] : memref<2x14x12xf32, #tpu.memory_space<vmem>>, vector<2x8x12xf32>
    %c0_58 = arith.constant 0 : index
    %c6_59 = arith.constant 6 : index
    %c0_60 = arith.constant 0 : index
    %38 = vector.load %arg14[%c0_58, %c6_59, %c0_60] : memref<2x14x12xf32, #tpu.memory_space<vmem>>, vector<2x8x12xf32>
    %39 = tpu.concatenate %32, %33, %34, %35, %36, %37, %38 in 2 : vector<2x8x12xf32>, vector<2x8x12xf32>, vector<2x8x12xf32>, vector<2x8x12xf32>, vector<2x8x12xf32>, vector<2x8x12xf32>, vector<2x8x12xf32> -> vector<2x8x84xf32>
    %40 = vector.shape_cast %39 : vector<2x8x84xf32> to vector<16x84xf32>
    %41 = arith.truncf %40 : vector<16x84xf32> to vector<16x84xbf16>
    %c0_61 = arith.constant 0 : index
    %c0_62 = arith.constant 0 : index
    %42 = vector.load %arg5[%c0_61, %c0_62] : memref<84x12xbf16, #tpu.memory_space<vmem>>, vector<84x12xbf16>
    %cst_63 = arith.constant dense<0.000000e+00> : vector<16x12xf32>
    %43 = tpu.matmul %41, %42, %cst_63 {dimension_numbers = #tpu.dot_dimension_numbers<[1], [0], [0], [1], [0, 0, 1, 1], [], []>} : vector<16x84xbf16>, vector<84x12xbf16>, vector<16x12xf32> -> vector<16x12xf32>
    %c0_64 = arith.constant 0 : index
    %c0_65 = arith.constant 0 : index
    %44 = vector.load %arg6[%c0_64, %c0_65] : memref<1x12xf32, #tpu.memory_space<vmem>>, vector<1x12xf32>
    %45 = vector.broadcast %44 : vector<1x12xf32> to vector<16x12xf32>
    %46 = arith.mulf %43, %45 : vector<16x12xf32>
    %c0_66 = arith.constant 0 : index
    %c0_67 = arith.constant 0 : index
    %47 = vector.load %arg7[%c0_66, %c0_67] : memref<1x12xf32, #tpu.memory_space<vmem>>, vector<1x12xf32>
    %48 = vector.broadcast %47 : vector<1x12xf32> to vector<16x12xf32>
    %49 = arith.addf %46, %48 : vector<16x12xf32>
    %cst_68 = arith.constant 0.000000e+00 : f32
    %50 = vector.broadcast %cst_68 : f32 to vector<16x12xf32>
    %51 = arith.cmpf ogt, %49, %50 : vector<16x12xf32>
    %c0_69 = arith.constant 0 : index
    %c0_70 = arith.constant 0 : index
    %52 = vector.load %arg8[%c0_69, %c0_70] : memref<1x12xf32, #tpu.memory_space<vmem>>, vector<1x12xf32>
    %53 = vector.broadcast %52 : vector<1x12xf32> to vector<16x12xf32>
    %54 = arith.mulf %53, %49 : vector<16x12xf32>
    %55 = arith.select %51, %49, %54 : vector<16x12xi1>, vector<16x12xf32>
    %c0_71 = arith.constant 0 : index
    %c0_72 = arith.constant 0 : index
    %c0_73 = arith.constant 0 : index
    %56 = vector.load %arg0[%c0_71, %c0_72, %c0_73] : memref<2x8x12xf32, #tpu.memory_space<vmem>>, vector<2x8x12xf32>
    %57 = vector.shape_cast %56 : vector<2x8x12xf32> to vector<16x12xf32>
    %58 = arith.truncf %57 : vector<16x12xf32> to vector<16x12xbf16>
    %c0_74 = arith.constant 0 : index
    %c0_75 = arith.constant 0 : index
    %59 = vector.load %arg9[%c0_74, %c0_75] : memref<12x12xbf16, #tpu.memory_space<vmem>>, vector<12x12xbf16>
    %cst_76 = arith.constant dense<0.000000e+00> : vector<16x12xf32>
    %60 = tpu.matmul %58, %59, %cst_76 {dimension_numbers = #tpu.dot_dimension_numbers<[1], [0], [0], [1], [0, 0, 1, 1], [], []>} : vector<16x12xbf16>, vector<12x12xbf16>, vector<16x12xf32> -> vector<16x12xf32>
    %c0_77 = arith.constant 0 : index
    %c0_78 = arith.constant 0 : index
    %61 = vector.load %arg10[%c0_77, %c0_78] : memref<1x12xf32, #tpu.memory_space<vmem>>, vector<1x12xf32>
    %62 = vector.broadcast %61 : vector<1x12xf32> to vector<16x12xf32>
    %63 = arith.addf %60, %62 : vector<16x12xf32>
    %64 = arith.addf %55, %63 : vector<16x12xf32>
    %c0_79 = arith.constant 0 : index
    %c0_80 = arith.constant 0 : index
    %65 = vector.load %arg11[%c0_79, %c0_80] : memref<1x12xf32, #tpu.memory_space<vmem>>, vector<1x12xf32>
    %cst_81 = arith.constant 0.000000e+00 : f32
    %66 = vector.broadcast %cst_81 : f32 to vector<16x12xf32>
    %67 = arith.cmpf ogt, %64, %66 : vector<16x12xf32>
    %68 = vector.broadcast %65 : vector<1x12xf32> to vector<16x12xf32>
    %69 = arith.mulf %68, %64 : vector<16x12xf32>
    %70 = arith.select %67, %64, %69 : vector<16x12xi1>, vector<16x12xf32>
    %71 = vector.shape_cast %70 : vector<16x12xf32> to vector<2x8x12xf32>
    %c0_82 = arith.constant 0 : index
    %c0_83 = arith.constant 0 : index
    %c0_84 = arith.constant 0 : index
    %72 = vector.load %arg12[%c0_82, %c0_83, %c0_84] : memref<2x8x12xf32, #tpu.memory_space<vmem>>, vector<2x8x12xf32>
    tpu.vector_store %arg12[%c0_82, %c0_83, %c0_84], %71 {strides = array<i32>} : memref<2x8x12xf32, #tpu.memory_space<vmem>>, vector<2x8x12xf32>,
    return
  }
}

</mosaic_0001>

<bundles_post_ra>
// kernel: tpu_custom_call.1
= control target key start
LH: loop header
LB: loop body
LE: loop exit
PB: predicated region body
PF: predicated region fallthrough
CT: control target
= control target key end

     0   :  { %vm45_vm0 = vcmask 97280   ;;  %vm47_vm1 = vcmask 95232   ;;  %v742_v2 = vmov 0.0   ;;  %vm181_vm2 = vcmask 1041408   ;;  %s743_s30 = smov 12   ;;  %s745_s15 = smov 36   ;;  %s976_s0 = inlined_call_operand.vmem [shape: f32[2,8,12], index: 0, kind: input, shape index: {}]   ;;  %s977_s1 = inlined_call_operand.vmem [shape: bf16[84,12], index: 1, kind: input, shape index: {}]   ;;  %s978_s2 = inlined_call_operand.vmem [shape: f32[1,12], index: 2, kind: input, shape index: {}]   ;;  %s979_s3 = inlined_call_operand.vmem [shape: f32[1,12], index: 3, kind: input, shape index: {}]   ;;  %s980_s4 = inlined_call_operand.vmem [shape: f32[1,12], index: 4, kind: input, shape index: {}]   ;;  %s981_s5 = inlined_call_operand.vmem [shape: bf16[84,12], index: 5, kind: input, shape index: {}]   ;;  %s982_s6 = inlined_call_operand.vmem [shape: f32[1,12], index: 6, kind: input, shape index: {}]   ;;  %s983_s7 = inlined_call_operand.vmem [shape: f32[1,12], index: 7, kind: input, shape index: {}]   ;;  %s984_s8 = inlined_call_operand.vmem [shape: f32[1,12], index: 8, kind: input, shape index: {}]   ;;  %s985_s9 = inlined_call_operand.vmem [shape: bf16[12,12], index: 9, kind: input, shape index: {}]   ;;  %s986_s10 = inlined_call_operand.vmem [shape: f32[1,12], index: 10, kind: input, shape index: {}]   ;;  %s987_s11 = inlined_call_operand.vmem [shape: f32[1,12], index: 11, kind: input, shape index: {}]   ;;  %s988_s12 = inlined_call_operand.hbm [shape: f32[2,8,12], index: 12, kind: output, shape index: {}]  }
   0x1   :  { %v821_v0 = vld [vmem:[%s976_s0] sm:$0xff]  ;;  %v826_v1 = vld [vmem:[%s976_s0 + $0x8] sm:$0xff]  ;;  %46 = vst.msk [vmem:[#allocation2] sm:$0xff] %vm45_vm0, %v742_v2  ;;  %49 = vst.msk [vmem:[#allocation2 + $0x10] sm:$0xff] %vm45_vm0, %v742_v2  ;;  %598 = vmatprep.subr.bf16.mxu0 %v742_v2  ;;  %614 = vmatprep.subr.bf16.mxu1 %v742_v2  ;;  %vm744_vm3 = vmmov 0   ;;  %s746_s16 = smov 24  }
   0x2   :  { %48 = vst.msk [vmem:[#allocation2 + $0x8] sm:$0x3f] %vm47_vm1, %v742_v2  ;;  %50 = vst.msk [vmem:[#allocation2 + $0x18] sm:$0x3f] %vm47_vm1, %v742_v2  ;;  %v708_v5 = vld [vmem:[%s977_s1 + $0x20] sm:$0xff]   ;;  %v709_v6 = vld [vmem:[%s977_s1 + $0x18] sm:$0xff]   ;;  %610 = vmatprep.mubr.msk.bf16.mxu0 %vm744_vm3, %v742_v2  ;;  %626 = vmatprep.mubr.msk.bf16.mxu1 %vm744_vm3, %v742_v2 }
   0x3   :  { %257 = vst.msk [vmem:[#allocation3] sm:$0xff] %vm45_vm0, %v742_v2  ;;  %259 = vst.msk [vmem:[#allocation3 + $0x10] sm:$0xff] %vm45_vm0, %v742_v2  ;;  %v707_v3 = vld [vmem:[%s977_s1 + $0x28] ss:$0 sps:$4 sm:$0x33]   ;;  %v710_v20 = vld [vmem:[%s977_s1 + $0x10] sm:$0xff]  }
   0x4   :  { %258 = vst.msk [vmem:[#allocation3 + $0x8] sm:$0x3f] %vm47_vm1, %v742_v2  ;;  %260 = vst.msk [vmem:[#allocation3 + $0x18] sm:$0x3f] %vm47_vm1, %v742_v2  ;;  %v183_v4 = vsel %vm181_vm2, %v707_v3, 0  ;;  %s747_s17 = smov 48  }
   0x5   :  { %51 = vst.msk [vmem:[#allocation2 + $0x6] sm:$0xff] %vm45_vm0, %v821_v0  ;;  %52 = vst.msk [vmem:[#allocation2 + $0x16] sm:$0xff] %vm45_vm0, %v826_v1  ;;  %599 = vmatpush3.bf16.msra.mxu0 %v183_v4  ;;  %v711_v26 = vld [vmem:[%s977_s1 + $0x8] sm:$0xff]  }
   0x6   :  { %600 = vmatprep.subr.bf16.mxu0 %v742_v2 }
   0x9   :  { %601 = vmatpush3.bf16.msra.mxu0 %v708_v5 }
   0xa   :  { %602 = vmatprep.subr.bf16.mxu0 %v742_v2 }
   0xc   :  { %v55_v7 = vld [vmem:[#allocation2 + $0x1] sm:$0xff]  ;;  %v56_v8 = vld [vmem:[#allocation2 + $0x11] sm:$0xff] }
   0xd   :  { %v59_v9 = vld [vmem:[#allocation2 + $0x3] sm:$0xff]  ;;  %v647_v10 = vpack.i.bf16 %v56_v8, %v55_v7  ;;  %v60_v11 = vld [vmem:[#allocation2 + $0x13] sm:$0xff]  ;;  %603 = vmatpush3.bf16.msra.mxu0 %v709_v6 }
   0xe   :  { %v57_v12 = vld [vmem:[#allocation2 + $0x2] sm:$0xff]  ;;  %v58_v13 = vld [vmem:[#allocation2 + $0x12] sm:$0xff]  ;;  %v657_v14 = vpack.i.bf16 %v60_v11, %v59_v9  ;;  %604 = vmatprep.subr.bf16.mxu0 %v742_v2 }
   0xf   :  { %v61_v15 = vld [vmem:[#allocation2 + $0x4] sm:$0xff]  ;;  %v62_v16 = vld [vmem:[#allocation2 + $0x14] sm:$0xff]  ;;  %648 = vrot.lane.b32.xlu0 %v647_v10, %s743_s30  ;;  %v652_v17 = vpack.i.bf16 %v58_v13, %v57_v12 }
  0x10   :  { %v63_v18 = vld [vmem:[#allocation2 + $0x5] sm:$0xff]  ;;  %v64_v19 = vld [vmem:[#allocation2 + $0x15] sm:$0xff]  ;;  %658 = vrot.lane.b32.xlu1 %v657_v14, %s745_s15  ;;  %v662_v21 = vpack.i.bf16 %v62_v16, %v61_v15 }
  0x11   :  { %v65_v22 = vld [vmem:[#allocation2 + $0x6] sm:$0xff]  ;;  %v66_v23 = vld [vmem:[#allocation2 + $0x16] sm:$0xff]  ;;  %v667_v24 = vpack.i.bf16 %v64_v19, %v63_v18  ;;  %605 = vmatpush3.bf16.msra.mxu0 %v710_v20 }
  0x12   :  { %v672_v25 = vpack.i.bf16 %v66_v23, %v65_v22 }
  0x13   :  { %653 = vrot.lane.b32.xlu0 %v652_v17, %s746_s16 }
  0x14   :  { %663 = vrot.lane.b32.xlu1 %v662_v21, %s747_s17 }
  0x15   :  { %17 = vsyncpa [#allocation5], 0  ;;  %606 = vmatprep.subr.bf16.mxu0 %v742_v2  ;;  %s748_s20 = smov 60   ;;  %s749_s21 = smov 72   ;;  %v712_v27 = vld [vmem:[%s977_s1] sm:$0xff]   ;;  %v54_v32 = vld [vmem:[#allocation2 + $0x10] sm:$0xff] }
  0x16   :  { %607 = vmatpush3.bf16.msra.mxu0 %v711_v26  ;;  %v53_v33 = vld [vmem:[#allocation2] sm:$0xff]  ;;  %vm117_vm4 = vcmask 195584   ;;  %vm120_vm5 = vcmask 293888   ;;  %vm123_vm6 = vcmask 392192   ;;  %vm126_vm7 = vcmask 490496   ;;  %v715_v3 = vld [vmem:[%s981_s5 + $0x18] sm:$0xff]  }
  0x17   :  { %668 = vrot.lane.b32.xlu0 %v667_v24, %s748_s20  ;;  %608 = vmatprep.subr.bf16.mxu0 %v742_v2  ;;  %vm129_vm8 = vcmask 588800   ;;  %vm177_vm9 = vcmask 687104   ;;  %v713_v61 = vld [vmem:[%s981_s5 + $0x28] ss:$0 sps:$4 sm:$0x33]   ;;  %v714_v63 = vld [vmem:[%s981_s5 + $0x20] sm:$0xff]  }
  0x18   :  { %673 = vrot.lane.b32.xlu1 %v672_v25, %s749_s21  ;;  %v386_v62 = vsel %vm181_vm2, %v713_v61, 0  ;;  %v565_v4 = vld [vmem:[%s978_s2] ss:$0 sm:$0xff]  ;;  %v716_v19 = vld [vmem:[%s981_s5 + $0x10] sm:$0xff]   ;;  %v717_v20 = vld [vmem:[%s981_s5 + $0x8] sm:$0xff]   ;;  %vm480_vm12 = vcmask 1045504  }
  0x19   :  { %615 = vmatpush3.bf16.msra.mxu1 %v386_v62  ;;  %v566_v6 = vld [vmem:[%s979_s3] ss:$0 sm:$0xff] }
  0x1a   :  { %609 = vmatpush3.bf16.msra.mxu0 %v712_v27  ;;  %616 = vmatprep.subr.bf16.mxu1 %v742_v2  ;;  %v567_v8 = vld [vmem:[%s980_s4] ss:$0 sm:$0xff] }
  0x1b   :  { %630 = vmatprep.subr.bf16.mxu0 %v742_v2  ;;  %v718_v22 = vld [vmem:[%s985_s9] sm:$0x3f]  }
  0x1d   :  { %617 = vmatpush3.bf16.msra.mxu1 %v714_v63 }
  0x1e   :  { %618 = vmatprep.subr.bf16.mxu1 %v742_v2 }
  0x21   :  { %619 = vmatpush3.bf16.msra.mxu1 %v715_v3 }
  0x22   :  { %620 = vmatprep.subr.bf16.mxu1 %v742_v2 }
  0x25   :  { %621 = vmatpush3.bf16.msra.mxu1 %v716_v19  ;;  %v578_v19 = vld [vmem:[%s986_s10] ss:$0 sm:$0xff] }
  0x26   :  { %622 = vmatprep.subr.bf16.mxu1 %v742_v2 }
  0x29   :  { %623 = vmatpush3.bf16.msra.mxu1 %v717_v20 }
  0x2a   :  { %624 = vmatprep.subr.bf16.mxu1 %v742_v2 }
  0x81   :  { %v649_v28 = vpop.permute.xlu0 %648 }
  0x82   :  { %v659_v29 = vpop.permute.xlu1 %658  ;;  %v651_v30 = vunpack.i.h.bf16 %v649_v28  ;;  %v650_v31 = vunpack.i.l.bf16 %v649_v28  ;;  %v482_v28 = vsel %vm480_vm12, %v718_v22, 0 }
  0x83   :  { %v661_v35 = vunpack.i.h.bf16 %v659_v29  ;;  %v660_v36 = vunpack.i.l.bf16 %v659_v29 }
  0x84   :  { %v116_v40 = vsel %vm45_vm0, %v54_v32, %v651_v30  ;;  %v115_v41 = vsel %vm45_vm0, %v53_v33, %v650_v31  ;;  %v719_v31 = vld [vmem:[%s981_s5] sm:$0xff]   ;;  %v462_v32 = vpack.c.bf16 %v826_v1, %v821_v0 }
  0x85   :  { %v654_v34 = vpop.permute.xlu0 %653  ;;  %625 = vmatpush3.bf16.msra.mxu1 %v719_v31 }
  0x86   :  { %v656_v37 = vunpack.i.h.bf16 %v654_v34  ;;  %v655_v38 = vunpack.i.l.bf16 %v654_v34  ;;  %v664_v39 = vpop.permute.xlu1 %663 }
  0x87   :  { %v666_v42 = vunpack.i.h.bf16 %v664_v39  ;;  %v665_v43 = vunpack.i.l.bf16 %v664_v39 }
  0x88   :  { %v118_v44 = vsel %vm117_vm4, %v115_v41, %v655_v38  ;;  %v119_v45 = vsel %vm117_vm4, %v116_v40, %v656_v37 }
  0x89   :  { %v121_v46 = vsel %vm120_vm5, %v118_v44, %v660_v36  ;;  %v122_v47 = vsel %vm120_vm5, %v119_v45, %v661_v35  ;;  %v669_v48 = vpop.permute.xlu0 %668 }
  0x8a   :  { %v124_v49 = vsel %vm123_vm6, %v121_v46, %v665_v43  ;;  %v125_v50 = vsel %vm123_vm6, %v122_v47, %v666_v42  ;;  %v671_v51 = vunpack.i.h.bf16 %v669_v48  ;;  %v670_v52 = vunpack.i.l.bf16 %v669_v48  ;;  %v674_v53 = vpop.permute.xlu1 %673 }
  0x8b   :  { %v676_v54 = vunpack.i.h.bf16 %v674_v53  ;;  %v675_v55 = vunpack.i.l.bf16 %v674_v53 }
  0x8c   :  { %v127_v56 = vsel %vm126_vm7, %v124_v49, %v670_v52  ;;  %v128_v57 = vsel %vm126_vm7, %v125_v50, %v671_v51 }
  0x8d   :  { %v130_v58 = vsel %vm129_vm8, %v127_v56, %v675_v55  ;;  %v131_v59 = vsel %vm129_vm8, %v128_v57, %v676_v54 }
  0x8e   :  { %v132_v60 = vpack.c.bf16 %v131_v59, %v130_v58 }
  0x90   :  { %611 = vmatmul.mubr.msk.bf16.vlgmr.msra.gmra.mxu0 %vm177_vm9, %v132_v60 }
  0x91   :  { %632 = vmatprep.mubr.msk.bf16.mxu0 %vm744_vm3, %v742_v2  ;;  %631 = vmatpush3.bf16.msra.mxu0 %v482_v28 }
  0x98   :  { %633 = vmatmul.mubr.msk.bf16.vlgmr.msra.gmra.mxu0 %vm45_vm0, %v462_v32 }
 0x150   :  { %v219_v5 = vpop.f32.mrf.mxu0 }
 0x151   :  { %v233_v7 = vmul.f32 %v565_v4, %v219_v5 }
 0x152   :  { %v612_v9 = vpop.f32.mrf.mxu0 }
 0x153   :  { %v242_v10 = vadd.f32 %v566_v6, %v233_v7 }
 0x154   :  { %v222_v11 = vpop.f32.mrf.mxu0 }
 0x155   :  { %vm244_vm10 = vcmp.gt.f32.partialorder %v242_v10, 0.0  ;;  %v253_v12 = vmul.f32 %v567_v8, %v242_v10  ;;  %v234_v13 = vmul.f32 %v565_v4, %v222_v11 }
 0x156   :  { %v613_v14 = vpop.f32.mrf.mxu0 }
 0x157   :  { %v255_v15 = vsel %vm244_vm10, %v242_v10, %v253_v12  ;;  %v243_v16 = vadd.f32 %v566_v6, %v234_v13 }
 0x158   :  { %261 = vst.msk [vmem:[#allocation3 + $0x6] sm:$0xff] %vm45_vm0, %v255_v15  ;;  %v518_v12 = vpop.f32.mrf.mxu0 }
 0x159   :  { %vm245_vm11 = vcmp.gt.f32.partialorder %v243_v16, 0.0  ;;  %v254_v17 = vmul.f32 %v567_v8, %v243_v16 }
 0x15a   :  { %v634_v13 = vpop.f32.mrf.mxu0 }
 0x15b   :  { %v256_v18 = vsel %vm245_vm11, %v243_v16, %v254_v17  ;;  %v575_v16 = vld [vmem:[%s982_s6] ss:$0 sm:$0xff] }
 0x15c   :  { %262 = vst.msk [vmem:[#allocation3 + $0x16] sm:$0xff] %vm45_vm0, %v256_v18  ;;  %v521_v14 = vpop.f32.mrf.mxu0  ;;  %v576_v18 = vld [vmem:[%s983_s7] ss:$0 sm:$0xff] }
 0x15e   :  { %v635_v15 = vpop.f32.mrf.mxu0 }
 0x15f   :  { %v267_v21 = vld [vmem:[#allocation3 + $0x2] sm:$0xff] }
 0x160   :  { %v265_v24 = vld [vmem:[#allocation3 + $0x1] sm:$0xff] }
 0x161   :  { %v271_v33 = vld [vmem:[#allocation3 + $0x4] sm:$0xff] }
 0x162   :  { %v269_v34 = vld [vmem:[#allocation3 + $0x3] sm:$0xff] }
 0x163   :  { %v268_v23 = vld [vmem:[#allocation3 + $0x12] sm:$0xff]  ;;  %v275_v38 = vld [vmem:[#allocation3 + $0x6] sm:$0xff] }
 0x164   :  { %v266_v25 = vld [vmem:[#allocation3 + $0x11] sm:$0xff]  ;;  %v682_v26 = vpack.i.bf16 %v268_v23, %v267_v21  ;;  %v273_v39 = vld [vmem:[#allocation3 + $0x5] sm:$0xff]  ;;  %v577_v21 = vld [vmem:[%s984_s8] ss:$0 sm:$0xff]  ;;  %s750_s8 = smov [#allocation4]  }
 0x165   :  { %v677_v27 = vpack.i.bf16 %v266_v25, %v265_v24  ;;  %v272_v29 = vld [vmem:[#allocation3 + $0x14] sm:$0xff]  ;;  %v263_v46 = vld [vmem:[#allocation3] sm:$0xff]  ;;  %v519_v24 = vadd.f32 %v578_v19, %v518_v12  ;;  %s547_s10 = sshll.u32 %s750_s8, 4  ;;  %s548_s10 = int_to_ptr.vmem [resolvable:$true] %s547_s10 }
 0x166   :  { %v270_v30 = vld [vmem:[#allocation3 + $0x13] sm:$0xff]  ;;  %683 = vrot.lane.b32.xlu1 %v682_v26, %s746_s16  ;;  %v692_v35 = vpack.i.bf16 %v272_v29, %v271_v33  ;;  %p725_p1 = scmp.lt.s32.totalorder %s548_s10, %s548_s10 }
 0x167   :  { %678 = vrot.lane.b32.xlu0 %v677_v27, %s743_s30  ;;  %v687_v2 = vpack.i.bf16 %v270_v30, %v269_v34  ;;  %v276_v36 = vld [vmem:[#allocation3 + $0x16] sm:$0xff]  ;;  %v581_v30 = vld [vmem:[%s987_s11] ss:$0 sm:$0xff]  ;;  %s720_s11 = scalar_lea.vmem %s548_s10, 256 }
 0x168   :  { %v274_v37 = vld [vmem:[#allocation3 + $0x15] sm:$0xff]  ;;  %v702_v0 = vpack.i.bf16 %v276_v36, %v275_v38  ;;  %p721_p0 = scmp.ne.s32.totalorder %s548_s10, %s720_s11  ;;  %p726_p2 = scmp.lt.s32.totalorder %s720_s11, %s720_s11 }
 0x169   :  { %v697_v1 = vpack.i.bf16 %v274_v37, %v273_v39  ;;  %v264_v47 = vld [vmem:[#allocation3 + $0x10] sm:$0xff] }
 0x16a   :  { %693 = vrot.lane.b32.xlu1 %v692_v35, %s747_s17  ;;  %v522_v35 = vadd.f32 %v578_v19, %v521_v14  ;;  %p727_p3 = por %p726_p2, %p725_p1 }
 0x16b   :  { %688 = vrot.lane.b32.xlu0 %v687_v2, %s745_s15 }
 0x16c   :  { %p728_p4 = pnand %p727_p3, %p721_p0 }
 0x16e   :  { %703 = vrot.lane.b32.xlu1 %v702_v0, %s749_s21 }
 0x16f   :  { %698 = vrot.lane.b32.xlu0 %v697_v1, %s748_s20 }
 0x1d8   :  { %v684_v40 = vpop.permute.xlu1 %683 }
 0x1d9   :  { %v679_v41 = vpop.permute.xlu0 %678  ;;  %v686_v44 = vunpack.i.h.bf16 %v684_v40  ;;  %v685_v45 = vunpack.i.l.bf16 %v684_v40 }
 0x1da   :  { %v681_v42 = vunpack.i.h.bf16 %v679_v41  ;;  %v680_v43 = vunpack.i.l.bf16 %v679_v41 }
 0x1dc   :  { %v325_v48 = vsel %vm45_vm0, %v263_v46, %v680_v43  ;;  %v326_v49 = vsel %vm45_vm0, %v264_v47, %v681_v42  ;;  %v694_v50 = vpop.permute.xlu1 %693 }
 0x1dd   :  { %v689_v51 = vpop.permute.xlu0 %688  ;;  %v696_v54 = vunpack.i.h.bf16 %v694_v50  ;;  %v695_v55 = vunpack.i.l.bf16 %v694_v50  ;;  %v327_v56 = vsel %vm117_vm4, %v325_v48, %v685_v45  ;;  %v328_v57 = vsel %vm117_vm4, %v326_v49, %v686_v44 }
 0x1de   :  { %v691_v52 = vunpack.i.h.bf16 %v689_v51  ;;  %v690_v53 = vunpack.i.l.bf16 %v689_v51 }
 0x1e0   :  { %v329_v58 = vsel %vm120_vm5, %v327_v56, %v690_v53  ;;  %v330_v59 = vsel %vm120_vm5, %v328_v57, %v691_v52  ;;  %v704_v60 = vpop.permute.xlu1 %703 }
 0x1e1   :  { %v699_v61 = vpop.permute.xlu0 %698  ;;  %v706_v62 = vunpack.i.h.bf16 %v704_v60  ;;  %v705_v63 = vunpack.i.l.bf16 %v704_v60  ;;  %v331_v5 = vsel %vm123_vm6, %v329_v58, %v695_v55  ;;  %v332_v6 = vsel %vm123_vm6, %v330_v59, %v696_v54 }
 0x1e2   :  { %v701_v3 = vunpack.i.h.bf16 %v699_v61  ;;  %v700_v4 = vunpack.i.l.bf16 %v699_v61 }
 0x1e4   :  { %v333_v7 = vsel %vm126_vm7, %v331_v5, %v700_v4  ;;  %v334_v8 = vsel %vm126_vm7, %v332_v6, %v701_v3 }
 0x1e5   :  { %v335_v9 = vsel %vm129_vm8, %v333_v7, %v705_v63  ;;  %v336_v10 = vsel %vm129_vm8, %v334_v8, %v706_v62 }
 0x1e6   :  { %v337_v11 = vpack.c.bf16 %v336_v10, %v335_v9 }
 0x1e8   :  { %627 = vmatmul.mubr.msk.bf16.vlgmr.msra.gmra.mxu1 %vm177_vm9, %v337_v11 }
 0x2a8   :  { %v422_v17 = vpop.f32.mrf.mxu1 }
 0x2a9   :  { %v436_v20 = vmul.f32 %v575_v16, %v422_v17 }
 0x2aa   :  { %v628_v22 = vpop.f32.mrf.mxu1 }
 0x2ab   :  { %v445_v23 = vadd.f32 %v576_v18, %v436_v20 }
 0x2ac   :  { %v425_v25 = vpop.f32.mrf.mxu1 }
 0x2ad   :  { %vm447_vm13 = vcmp.gt.f32.partialorder %v445_v23, 0.0  ;;  %v456_v26 = vmul.f32 %v577_v21, %v445_v23  ;;  %v437_v27 = vmul.f32 %v575_v16, %v425_v25 }
 0x2ae   :  { %v629_v28 = vpop.f32.mrf.mxu1 }
 0x2af   :  { %v458_v29 = vsel %vm447_vm13, %v445_v23, %v456_v26  ;;  %v446_v31 = vadd.f32 %v576_v18, %v437_v27 }
 0x2b0   :  { %v525_v32 = vadd.f32 %v519_v24, %v458_v29 }
 0x2b1   :  { %vm448_vm14 = vcmp.gt.f32.partialorder %v446_v31, 0.0  ;;  %v457_v33 = vmul.f32 %v577_v21, %v446_v31 }
 0x2b2   :  { %v536_v34 = vmul.f32 %v581_v30, %v525_v32  ;;  %vm528_vm15 = vcmp.gt.f32.partialorder %v525_v32, 0.0 }
 0x2b3   :  { %v459_v2 = vsel %vm448_vm14, %v446_v31, %v457_v33 }
 0x2b4   :  { %v526_v36 = vadd.f32 %v522_v35, %v459_v2  ;;  %v538_v37 = vsel %vm528_vm15, %v525_v32, %v536_v34 }
 0x2b5   :  { %540 = vst.msk [vmem:[#allocation4] sm:$0xff] %vm45_vm0, %v538_v37 }
 0x2b6   :  { %v537_v38 = vmul.f32 %v581_v30, %v526_v36  ;;  %vm529_vm1 = vcmp.gt.f32.partialorder %v526_v36, 0.0 }
 0x2b8   :  { %v539_v39 = vsel %vm529_vm1, %v526_v36, %v537_v38 }
 0x2b9   :  { %541 = vst.msk [vmem:[#allocation4 + $0x8] sm:$0xff] %vm45_vm0, %v539_v39 }
 0x2ba   :  { %731 = shalt.err (!%p728_p4)
}
 0x2bb   :  { %s751_s25 = smov 128   ;;  %s752_s26 = smov 8  }
 0x2bc   :  { %553 = dma.vmem_to_hbm [thread:$0]  %s548_s10, 256, %s988_s12, [#allocation5], %s751_s25, %s751_s25, %s752_s26  }
 0x2bd   :  { %740 = dma.done.wait [#allocation5], 256  }
 0x2be   :  { %741 = vsyncadd [#allocation5], 4294967040 }
 0x2bf   :  { %557 = vsyncpa [#allocation5], 1 }

</bundles_post_ra>
